<compile_context>
chip_gen: v7x
topology: tpu7x:2x2x1
jax: 0.10.0
libtpu: 0.0.40
codegen_flags: <defaults>
</compile_context>

<pallas_src>
import functools

import jax
import jax.numpy as jnp
from jax import lax
from jax.experimental import pallas as pl
from jax.experimental.pallas import tpu as pltpu


def _head_kernel(x_ref, w_ref, b_ref, o_ref):
    # Dropout (eval mode) == identity.
    # TODO(synk): training-mode dropout (pltpu.prng_*) not implemented; this
    #             matches PyTorch .eval() semantics exactly.
    x = x_ref[...]                         # [TB, H]   bf16
    w = w_ref[...]                         # [Lp, H]   bf16 (PyTorch layout)
    b = b_ref[...]                         # [1, Lp]   f32
    # Contract on H directly (x @ W^T): MXU handles the transposed-RHS
    # contraction natively, so no transpose op is needed anywhere.
    acc = lax.dot_general(
        x, w,
        dimension_numbers=(((1,), (1,)), ((), ())),
        preferred_element_type=jnp.float32)            # [TB, Lp] f32
    o_ref[...] = (acc + b).astype(o_ref.dtype)


def _round_up(n, m):
    return ((n + m - 1) // m) * m


@functools.partial(jax.jit, static_argnames=("block_b",))
def hate_classification_head(x, weight, bias, *, block_b=512):
    """x: [B, H] float32, weight: [L, H] (PyTorch layout), bias: [L]."""
    B, H = x.shape
    L = weight.shape[0]

    # Lane-dense output: pad the label dim up to a multiple of 128 lanes.
    L_pad = _round_up(L, 128)

    # Batch tile: multiple of 8 sublanes, ~512 rows max.  With bf16 x a
    # double-buffered (512, 768) tile is < 2 MiB, comfortably inside v7x's
    # 64 MiB VMEM (and v5e/v6e's 128 MiB).
    TB = min(block_b, _round_up(B, 8))
    B_pad = _round_up(B, TB)

    # bf16 MXU inputs; f32 accumulation and f32 bias add preserve logits.
    x_bf = x.astype(jnp.bfloat16)
    if B_pad != B:
        x_bf = jnp.pad(x_bf, ((0, B_pad - B), (0, 0)))
    w_bf = jnp.zeros((L_pad, H), jnp.bfloat16).at[:L, :].set(
        weight.astype(jnp.bfloat16))
    b_f32 = jnp.zeros((1, L_pad), jnp.float32).at[0, :L].set(
        bias.astype(jnp.float32))

    grid = (B_pad // TB,)
    out = pl.pallas_call(
        _head_kernel,
        out_shape=jax.ShapeDtypeStruct((B_pad, L_pad), x.dtype),
        grid=grid,
        in_specs=[
            pl.BlockSpec((TB, H), lambda i: (i, 0)),       # x: batch-tiled
            pl.BlockSpec((L_pad, H), lambda i: (0, 0)),    # W: resident
            pl.BlockSpec((1, L_pad), lambda i: (0, 0)),    # bias: resident
        ],
        out_specs=pl.BlockSpec((TB, L_pad), lambda i: (i, 0)),
        compiler_params=pltpu.CompilerParams(
            dimension_semantics=("parallel",),             # megacore on v7x
        ),
    )(x_bf, w_bf, b_f32)

    return out[:B, :L]


if __name__ == "__main__":
    # Small shapes consistent with the module: batch=8, hidden_size=32, labels=4
    B, H, L = 8, 32, 4

    key = jax.random.PRNGKey(0)
    kx, kw, kb = jax.random.split(key, 3)

    x = jax.random.normal(kx, (B, H), dtype=jnp.float32)
    # Deterministic parameter init (synthetic, ~PyTorch Linear default scale).
    bound = 1.0 / (H ** 0.5)
    weight = jax.random.uniform(kw, (L, H), dtype=jnp.float32,
                                minval=-bound, maxval=bound)
    bias = jax.random.uniform(kb, (L,), dtype=jnp.float32,
                              minval=-bound, maxval=bound)

    out = hate_classification_head(x, weight, bias)
    out = jax.block_until_ready(out)

    # Reference check against plain-JAX linear (dropout == identity in eval).
    # Tolerance loosened because the kernel feeds bf16 inputs to the MXU
    # (with f32 accumulation).
    ref = x @ weight.T + bias
    assert out.shape == (B, L)
    assert jnp.allclose(out, ref, atol=2e-2, rtol=2e-2), \
        f"max abs err {jnp.max(jnp.abs(out - ref))}"

    print("KERNEL_OK")
</pallas_src>

<mosaic_0001>
module attributes {stable_mosaic.version = 11 : i64} {
  func.func @_head_kernel(%arg0: i32, %arg1: memref<8x32xbf16, #tpu.memory_space<vmem>>, %arg2: memref<128x32xbf16, #tpu.memory_space<vmem>>, %arg3: memref<1x128xf32, #tpu.memory_space<vmem>>, %arg4: memref<8x128xf32, #tpu.memory_space<vmem>>) attributes {dimension_semantics = [#tpu.dimension_semantics<parallel>], iteration_bounds = array<i64: 1>, scalar_prefetch = 0 : i64, scratch_operands = 0 : i64, tpu.core_type = #tpu.core_type<tc>, window_params = [{transform_indices = @transform_0, window_bounds = array<i64: 8, 32>}, {pipeline_mode = #tpu.pipeline_mode<synchronous>, transform_indices = @transform_1, window_bounds = array<i64: 128, 32>}, {pipeline_mode = #tpu.pipeline_mode<synchronous>, transform_indices = @transform_2, window_bounds = array<i64: 1, 128>}, {transform_indices = @transform_3, window_bounds = array<i64: 8, 128>}]} {
    %c0 = arith.constant 0 : index
    %c0_0 = arith.constant 0 : index
    %0 = vector.load %arg1[%c0, %c0_0] : memref<8x32xbf16, #tpu.memory_space<vmem>>, vector<8x32xbf16>
    %c0_1 = arith.constant 0 : index
    %c0_2 = arith.constant 0 : index
    %1 = vector.load %arg2[%c0_1, %c0_2] : memref<128x32xbf16, #tpu.memory_space<vmem>>, vector<128x32xbf16>
    %c0_3 = arith.constant 0 : index
    %c0_4 = arith.constant 0 : index
    %2 = vector.load %arg3[%c0_3, %c0_4] : memref<1x128xf32, #tpu.memory_space<vmem>>, vector<1x128xf32>
    %cst = arith.constant dense<0.000000e+00> : vector<8x128xf32>
    %3 = tpu.matmul %0, %1, %cst {dimension_numbers = #tpu.dot_dimension_numbers<[1], [1], [0], [0], [0, 0, 1, 0], [], []>} : vector<8x32xbf16>, vector<128x32xbf16>, vector<8x128xf32> -> vector<8x128xf32>
    %4 = vector.broadcast %2 : vector<1x128xf32> to vector<8x128xf32>
    %5 = arith.addf %3, %4 : vector<8x128xf32>
    %c0_5 = arith.constant 0 : index
    %c0_6 = arith.constant 0 : index
    %6 = vector.load %arg4[%c0_5, %c0_6] : memref<8x128xf32, #tpu.memory_space<vmem>>, vector<8x128xf32>
    tpu.vector_store %arg4[%c0_5, %c0_6], %5 {strides = array<i32>} : memref<8x128xf32, #tpu.memory_space<vmem>>, vector<8x128xf32>,
    return
  }
  func.func @transform_0(%arg0: i32) -> (i32, i32) {
    %c0_i32 = arith.constant 0 : i32
    %c0_i32_0 = arith.constant 0 : i32
    return %arg0, %c0_i32 : i32, i32
  }
  func.func @transform_1(%arg0: i32) -> (i32, i32) {
    %c0_i32 = arith.constant 0 : i32
    %c0_i32_0 = arith.constant 0 : i32
    %c0_i32_1 = arith.constant 0 : i32
    return %c0_i32, %c0_i32_0 : i32, i32
  }
  func.func @transform_2(%arg0: i32) -> (i32, i32) {
    %c0_i32 = arith.constant 0 : i32
    %c0_i32_0 = arith.constant 0 : i32
    %c0_i32_1 = arith.constant 0 : i32
    return %c0_i32, %c0_i32_0 : i32, i32
  }
  func.func @transform_3(%arg0: i32) -> (i32, i32) {
    %c0_i32 = arith.constant 0 : i32
    %c0_i32_0 = arith.constant 0 : i32
    return %arg0, %c0_i32 : i32, i32
  }
}

</mosaic_0001>

<bundles_post_ra>
// kernel: hate_classification_head.1
= control target key start
LH: loop header
LB: loop body
LE: loop exit
PB: predicated region body
PF: predicated region fallthrough
CT: control target
= control target key end

     0   :  { %vm79_vm0 = vcmask 261120   ;;  %v201_v0 = vmov 0.0   ;;  %vm202_vm1 = vmmov 0   ;;  %s265_s1 = inlined_call_operand.vmem [shape: bf16[128,32], index: 1, kind: input, shape index: {}]   ;;  %s266_s0 = inlined_call_operand.vmem [shape: bf16[8,32], index: 0, kind: input, shape index: {}]   ;;  %s267_s2 = inlined_call_operand.vmem [shape: f32[1,128], index: 2, kind: input, shape index: {}]   ;;  %s268_s3 = inlined_call_operand.vmem [shape: f32[8,128], index: 3, kind: output, shape index: {}]  }
   0x1   :  { %171 = vmatprep.subr.bf16.mxu0 %v201_v0  ;;  %v193_v1 = vld [vmem:[%s265_s1] sm:$0xff]   ;;  %187 = vmatprep.mubr.msk.bf16.mxu0 %vm202_vm1, %v201_v0  ;;  %v194_v3 = vld [vmem:[%s265_s1 + $0x8] sm:$0xff]   ;;  %v195_v5 = vld [vmem:[%s265_s1 + $0x10] sm:$0xff]  }
   0x2   :  { %v84_v2 = vsel %vm79_vm0, %v193_v1, 0  ;;  %v87_v4 = vsel %vm79_vm0, %v194_v3, 0  ;;  %v90_v6 = vsel %vm79_vm0, %v195_v5, 0  ;;  %v196_v7 = vld [vmem:[%s265_s1 + $0x18] sm:$0xff]   ;;  %v197_v9 = vld [vmem:[%s265_s1 + $0x20] sm:$0xff]   ;;  %v198_v11 = vld [vmem:[%s265_s1 + $0x28] sm:$0xff]  }
   0x3   :  { %172 = vmatpush3.bf16.xpose.msra.mxu0 %v84_v2  ;;  %v93_v8 = vsel %vm79_vm0, %v196_v7, 0  ;;  %v96_v10 = vsel %vm79_vm0, %v197_v9, 0  ;;  %v99_v12 = vsel %vm79_vm0, %v198_v11, 0  ;;  %v199_v13 = vld [vmem:[%s265_s1 + $0x30] sm:$0xff]   ;;  %v200_v15 = vld [vmem:[%s265_s1 + $0x38] sm:$0xff]  }
   0x4   :  { %173 = vmatprep.subr.bf16.mxu0 %v201_v0  ;;  %v102_v14 = vsel %vm79_vm0, %v199_v13, 0  ;;  %v105_v16 = vsel %vm79_vm0, %v200_v15, 0  ;;  %v15_v17 = vld [vmem:[%s266_s0] sm:$0xf] }
   0x5   :  { %v152_v18 = vld [vmem:[%s267_s2] ss:$0 sm:$0xff] }
   0xb   :  { %174 = vmatpush3.bf16.xpose.msra.mxu0 %v87_v4 }
   0xc   :  { %175 = vmatprep.subr.bf16.mxu0 %v201_v0 }
  0x13   :  { %176 = vmatpush3.bf16.xpose.msra.mxu0 %v90_v6 }
  0x14   :  { %177 = vmatprep.subr.bf16.mxu0 %v201_v0 }
  0x1b   :  { %178 = vmatpush3.bf16.xpose.msra.mxu0 %v93_v8 }
  0x1c   :  { %179 = vmatprep.subr.bf16.mxu0 %v201_v0 }
  0x23   :  { %180 = vmatpush3.bf16.xpose.msra.mxu0 %v96_v10 }
  0x24   :  { %181 = vmatprep.subr.bf16.mxu0 %v201_v0 }
  0x2b   :  { %182 = vmatpush3.bf16.xpose.msra.mxu0 %v99_v12 }
  0x2c   :  { %183 = vmatprep.subr.bf16.mxu0 %v201_v0 }
  0x33   :  { %184 = vmatpush3.bf16.xpose.msra.mxu0 %v102_v14 }
  0x34   :  { %185 = vmatprep.subr.bf16.mxu0 %v201_v0 }
  0x3b   :  { %186 = vmatpush3.bf16.xpose.msra.mxu0 %v105_v16 }
  0x42   :  { %188 = vmatmul.mubr.msk.bf16.vlgmr.msra.gmra.mrb[0].mxu0 %vm79_vm0, %v15_v17 }
 0x115   :  { %v141_v19 = vpop.f32.mrb[0].mxu0 }
 0x116   :  { %v142_v20 = vadd.f32 %v152_v18, %v141_v19  ;;  %v189_v21 = vpop.f32.mrb[1].mxu0 }
 0x117   :  { %v144_v22 = vpop.f32.mrb[2].mxu0 }
 0x118   :  { %147 = vst [vmem:[%s268_s3] sm:$0xff] %v142_v20  ;;  %v190_v23 = vpop.f32.mrb[3].mxu0 }

</bundles_post_ra>
